<compile_context>
chip_gen: v7x
topology: tpu7x:2x2x1
jax: 0.10.0
libtpu: 0.0.40
codegen_flags: <defaults>
</compile_context>

<pallas_src>
import functools

import jax
import jax.numpy as jnp
from jax import lax
from jax.experimental import pallas as pl
from jax.experimental.pallas import tpu as pltpu


LN_EPS = 1e-12


def bert_output_kernel(x_ref, w_ref, b_ref, res_ref, gamma_ref, beta_ref, o_ref):
    # dense: (TM, I) @ (I, H), bf16 operands, f32 accumulation on the MXU
    h = jnp.dot(x_ref[...], w_ref[...], preferred_element_type=jnp.float32)
    h = h + b_ref[...]                       # (1, H) broadcasts over rows
    # TODO(synk): dropout is identity at inference (torch eval mode); training-mode
    # stochastic dropout would need pltpu.prng_* — omitted intentionally.
    h = h + res_ref[...].astype(jnp.float32)  # residual add

    # LayerNorm over the feature (lane) axis — biased variance, eps inside sqrt,
    # matching BertLayerNorm semantics.
    u = jnp.mean(h, axis=-1, keepdims=True)
    d = h - u
    s = jnp.mean(d * d, axis=-1, keepdims=True)
    xn = d * lax.rsqrt(s + LN_EPS)            # rsqrt -> EUP slot (free under MXU)
    o_ref[...] = (gamma_ref[...] * xn + beta_ref[...]).astype(o_ref.dtype)


def _choose_tm(m, target=512):
    # Row tile: large enough to hide per-step overhead / hit HBM roofline,
    # rounded to a sublane multiple (8), never larger than the padded problem.
    return min(target, ((m + 7) // 8) * 8)


@functools.partial(jax.jit, static_argnames=("row_tile",))
def bert_output(hidden_states, input_tensor, W, b, gamma, beta, *, row_tile=512):
    """hidden_states: (B, S, I); input_tensor: (B, S, H) -> (B, S, H)."""
    B, S, I = hidden_states.shape
    H = input_tensor.shape[-1]
    M = B * S
    out_dtype = input_tensor.dtype

    TM = _choose_tm(M, row_tile)
    n_tiles = pl.cdiv(M, TM)
    M_pad = n_tiles * TM

    # Flatten rows; cast GEMM operands to bf16 (f32 accumulation happens in-kernel).
    x2 = hidden_states.reshape(M, I).astype(jnp.bfloat16)
    W_bf = W.astype(jnp.bfloat16)
    r2 = input_tensor.reshape(M, H).astype(jnp.float32)
    b2 = b.reshape(1, H).astype(jnp.float32)
    g2 = gamma.reshape(1, H).astype(jnp.float32)
    be2 = beta.reshape(1, H).astype(jnp.float32)

    if M_pad != M:
        x2 = jnp.pad(x2, ((0, M_pad - M), (0, 0)))
        r2 = jnp.pad(r2, ((0, M_pad - M), (0, 0)))

    # VMEM budget: resident W/params + double-buffered x / residual / output tiles.
    resident = I * H * 2 + 3 * H * 4
    streamed = 2 * (TM * I * 2) + 2 * (TM * H * 4) + 2 * (TM * H * out_dtype.itemsize)
    vmem_limit = min(max(resident + streamed + (8 << 20), 32 << 20), 64 << 20)

    cost = pl.CostEstimate(
        flops=2 * M_pad * I * H,
        transcendentals=M_pad,  # one rsqrt per row
        bytes_accessed=(M_pad * I * 2 + I * H * 2 + M_pad * H * 4
                        + M_pad * H * out_dtype.itemsize),
    )

    out = pl.pallas_call(
        bert_output_kernel,
        out_shape=jax.ShapeDtypeStruct((M_pad, H), out_dtype),
        grid_spec=pltpu.PrefetchScalarGridSpec(
            num_scalar_prefetch=0,
            grid=(n_tiles,),
            in_specs=[
                pl.BlockSpec((TM, I), lambda i: (i, 0)),   # x: streamed per row tile
                pl.BlockSpec((I, H), lambda i: (0, 0)),    # W: resident
                pl.BlockSpec((1, H), lambda i: (0, 0)),    # bias: resident
                pl.BlockSpec((TM, H), lambda i: (i, 0)),   # residual: streamed
                pl.BlockSpec((1, H), lambda i: (0, 0)),    # gamma: resident
                pl.BlockSpec((1, H), lambda i: (0, 0)),    # beta: resident
            ],
            out_specs=pl.BlockSpec((TM, H), lambda i: (i, 0)),
        ),
        compiler_params=pltpu.CompilerParams(
            dimension_semantics=("parallel",),
            vmem_limit_bytes=vmem_limit,
        ),
        cost_estimate=cost,
    )(x2, W_bf, b2, r2, g2, be2)

    return out[:M].reshape(B, S, H)


def reference(hidden_states, input_tensor, W, b, gamma, beta):
    h = jnp.einsum("bsi,ih->bsh", hidden_states, W) + b
    h = h + input_tensor
    u = jnp.mean(h, axis=-1, keepdims=True)
    s = jnp.mean((h - u) ** 2, axis=-1, keepdims=True)
    xn = (h - u) / jnp.sqrt(s + LN_EPS)
    return gamma * xn + beta


if __name__ == "__main__":
    # small BERT-like config
    batch, seq = 2, 8
    intermediate_size, hidden_size = 256, 128

    key = jax.random.PRNGKey(0)
    k1, k2, k3, k4 = jax.random.split(key, 4)

    hidden_states = jax.random.normal(k1, (batch, seq, intermediate_size), jnp.float32)
    input_tensor = jax.random.normal(k2, (batch, seq, hidden_size), jnp.float32)

    # deterministic parameter init (nn.Linear-style scale), gamma=1, beta=0
    W = jax.random.normal(k3, (intermediate_size, hidden_size), jnp.float32) * (
        1.0 / jnp.sqrt(intermediate_size)
    )
    b = jax.random.normal(k4, (hidden_size,), jnp.float32) * 0.02
    gamma = jnp.ones((hidden_size,), jnp.float32)
    beta = jnp.zeros((hidden_size,), jnp.float32)

    out = bert_output(hidden_states, input_tensor, W, b, gamma, beta)
    out = jax.block_until_ready(out)

    ref = reference(hidden_states, input_tensor, W, b, gamma, beta)
    assert out.shape == (batch, seq, hidden_size)
    # bf16 matmul operands (f32 accumulation) -> slightly relaxed tolerance vs f32 ref
    assert jnp.allclose(out, ref, atol=3e-2, rtol=3e-2), "mismatch vs reference"

    print("KERNEL_OK")
</pallas_src>

<mosaic_0001>
module attributes {stable_mosaic.version = 11 : i64} {
  func.func @bert_output_kernel(%arg0: i32, %arg1: memref<16x256xbf16, #tpu.memory_space<vmem>>, %arg2: memref<256x128xbf16, #tpu.memory_space<vmem>>, %arg3: memref<1x128xf32, #tpu.memory_space<vmem>>, %arg4: memref<16x128xf32, #tpu.memory_space<vmem>>, %arg5: memref<1x128xf32, #tpu.memory_space<vmem>>, %arg6: memref<1x128xf32, #tpu.memory_space<vmem>>, %arg7: memref<16x128xf32, #tpu.memory_space<vmem>>) attributes {dimension_semantics = [#tpu.dimension_semantics<parallel>], iteration_bounds = array<i64: 1>, scalar_prefetch = 0 : i64, scratch_operands = 0 : i64, tpu.core_type = #tpu.core_type<tc>, window_params = [{transform_indices = @transform_0, window_bounds = array<i64: 16, 256>}, {pipeline_mode = #tpu.pipeline_mode<synchronous>, transform_indices = @transform_1, window_bounds = array<i64: 256, 128>}, {pipeline_mode = #tpu.pipeline_mode<synchronous>, transform_indices = @transform_2, window_bounds = array<i64: 1, 128>}, {transform_indices = @transform_3, window_bounds = array<i64: 16, 128>}, {pipeline_mode = #tpu.pipeline_mode<synchronous>, transform_indices = @transform_4, window_bounds = array<i64: 1, 128>}, {pipeline_mode = #tpu.pipeline_mode<synchronous>, transform_indices = @transform_5, window_bounds = array<i64: 1, 128>}, {transform_indices = @transform_6, window_bounds = array<i64: 16, 128>}]} {
    %c0 = arith.constant 0 : index
    %c0_0 = arith.constant 0 : index
    %0 = vector.load %arg1[%c0, %c0_0] : memref<16x256xbf16, #tpu.memory_space<vmem>>, vector<16x256xbf16>
    %c0_1 = arith.constant 0 : index
    %c0_2 = arith.constant 0 : index
    %1 = vector.load %arg2[%c0_1, %c0_2] : memref<256x128xbf16, #tpu.memory_space<vmem>>, vector<256x128xbf16>
    %cst = arith.constant dense<0.000000e+00> : vector<16x128xf32>
    %2 = tpu.matmul %0, %1, %cst {dimension_numbers = #tpu.dot_dimension_numbers<[1], [0], [0], [1], [0, 0, 1, 1], [], []>} : vector<16x256xbf16>, vector<256x128xbf16>, vector<16x128xf32> -> vector<16x128xf32>
    %c0_3 = arith.constant 0 : index
    %c0_4 = arith.constant 0 : index
    %3 = vector.load %arg3[%c0_3, %c0_4] : memref<1x128xf32, #tpu.memory_space<vmem>>, vector<1x128xf32>
    %4 = vector.broadcast %3 : vector<1x128xf32> to vector<16x128xf32>
    %5 = arith.addf %2, %4 : vector<16x128xf32>
    %c0_5 = arith.constant 0 : index
    %c0_6 = arith.constant 0 : index
    %6 = vector.load %arg4[%c0_5, %c0_6] : memref<16x128xf32, #tpu.memory_space<vmem>>, vector<16x128xf32>
    %7 = arith.addf %5, %6 : vector<16x128xf32>
    %cst_7 = arith.constant dense<0.000000e+00> : vector<16xf32>
    %8 = vector.multi_reduction <add>, %7, %cst_7 [1] : vector<16x128xf32> to vector<16xf32>
    %9 = vector.shape_cast %8 : vector<16xf32> to vector<16x1xf32>
    %cst_8 = arith.constant 1.280000e+02 : f32
    %10 = vector.broadcast %cst_8 : f32 to vector<16x1xf32>
    %11 = arith.divf %9, %10 : vector<16x1xf32>
    %12 = vector.broadcast %11 : vector<16x1xf32> to vector<16x128xf32>
    %13 = arith.subf %7, %12 : vector<16x128xf32>
    %14 = arith.mulf %13, %13 : vector<16x128xf32>
    %cst_9 = arith.constant dense<0.000000e+00> : vector<16xf32>
    %15 = vector.multi_reduction <add>, %14, %cst_9 [1] : vector<16x128xf32> to vector<16xf32>
    %16 = vector.shape_cast %15 : vector<16xf32> to vector<16x1xf32>
    %cst_10 = arith.constant 1.280000e+02 : f32
    %17 = vector.broadcast %cst_10 : f32 to vector<16x1xf32>
    %18 = arith.divf %16, %17 : vector<16x1xf32>
    %cst_11 = arith.constant 9.99999996E-13 : f32
    %19 = vector.broadcast %cst_11 : f32 to vector<16x1xf32>
    %20 = arith.addf %18, %19 : vector<16x1xf32>
    %21 = math.rsqrt %20 : vector<16x1xf32>
    %22 = vector.broadcast %21 : vector<16x1xf32> to vector<16x128xf32>
    %23 = arith.mulf %13, %22 : vector<16x128xf32>
    %c0_12 = arith.constant 0 : index
    %c0_13 = arith.constant 0 : index
    %24 = vector.load %arg5[%c0_12, %c0_13] : memref<1x128xf32, #tpu.memory_space<vmem>>, vector<1x128xf32>
    %25 = vector.broadcast %24 : vector<1x128xf32> to vector<16x128xf32>
    %26 = arith.mulf %25, %23 : vector<16x128xf32>
    %c0_14 = arith.constant 0 : index
    %c0_15 = arith.constant 0 : index
    %27 = vector.load %arg6[%c0_14, %c0_15] : memref<1x128xf32, #tpu.memory_space<vmem>>, vector<1x128xf32>
    %28 = vector.broadcast %27 : vector<1x128xf32> to vector<16x128xf32>
    %29 = arith.addf %26, %28 : vector<16x128xf32>
    %c0_16 = arith.constant 0 : index
    %c0_17 = arith.constant 0 : index
    %30 = vector.load %arg7[%c0_16, %c0_17] : memref<16x128xf32, #tpu.memory_space<vmem>>, vector<16x128xf32>
    tpu.vector_store %arg7[%c0_16, %c0_17], %29 {strides = array<i32>} : memref<16x128xf32, #tpu.memory_space<vmem>>, vector<16x128xf32>,
    return
  }
  func.func @transform_0(%arg0: i32) -> (i32, i32) {
    %c0_i32 = arith.constant 0 : i32
    %c0_i32_0 = arith.constant 0 : i32
    return %arg0, %c0_i32 : i32, i32
  }
  func.func @transform_1(%arg0: i32) -> (i32, i32) {
    %c0_i32 = arith.constant 0 : i32
    %c0_i32_0 = arith.constant 0 : i32
    %c0_i32_1 = arith.constant 0 : i32
    return %c0_i32, %c0_i32_0 : i32, i32
  }
  func.func @transform_2(%arg0: i32) -> (i32, i32) {
    %c0_i32 = arith.constant 0 : i32
    %c0_i32_0 = arith.constant 0 : i32
    %c0_i32_1 = arith.constant 0 : i32
    return %c0_i32, %c0_i32_0 : i32, i32
  }
  func.func @transform_3(%arg0: i32) -> (i32, i32) {
    %c0_i32 = arith.constant 0 : i32
    %c0_i32_0 = arith.constant 0 : i32
    return %arg0, %c0_i32 : i32, i32
  }
  func.func @transform_4(%arg0: i32) -> (i32, i32) {
    %c0_i32 = arith.constant 0 : i32
    %c0_i32_0 = arith.constant 0 : i32
    %c0_i32_1 = arith.constant 0 : i32
    return %c0_i32, %c0_i32_0 : i32, i32
  }
  func.func @transform_5(%arg0: i32) -> (i32, i32) {
    %c0_i32 = arith.constant 0 : i32
    %c0_i32_0 = arith.constant 0 : i32
    %c0_i32_1 = arith.constant 0 : i32
    return %c0_i32, %c0_i32_0 : i32, i32
  }
  func.func @transform_6(%arg0: i32) -> (i32, i32) {
    %c0_i32 = arith.constant 0 : i32
    %c0_i32_0 = arith.constant 0 : i32
    return %arg0, %c0_i32 : i32, i32
  }
}

</mosaic_0001>

<bundles_post_ra>
// kernel: bert_output.1
= control target key start
LH: loop header
LB: loop body
LE: loop exit
PB: predicated region body
PF: predicated region fallthrough
CT: control target
= control target key end

     0   :  { %s488_s0 = inlined_call_operand.vmem [shape: bf16[16,256], index: 0, kind: input, shape index: {}]   ;;  %s489_s1 = inlined_call_operand.vmem [shape: bf16[256,128], index: 1, kind: input, shape index: {}]   ;;  %s490_s2 = inlined_call_operand.vmem [shape: f32[1,128], index: 2, kind: input, shape index: {}]   ;;  %s491_s3 = inlined_call_operand.vmem [shape: f32[16,128], index: 3, kind: input, shape index: {}]   ;;  %s492_s4 = inlined_call_operand.vmem [shape: f32[1,128], index: 4, kind: input, shape index: {}]   ;;  %s493_s5 = inlined_call_operand.vmem [shape: f32[1,128], index: 5, kind: input, shape index: {}]   ;;  %s494_s6 = inlined_call_operand.hbm [shape: f32[16,128], index: 6, kind: output, shape index: {}]  }
   0x1   :  { %v322_v0 = vld [vmem:[%s489_s1 + $0x40] sm:$0xff]   ;;  %v324_v2 = vld [vmem:[%s489_s1 + $0x48] sm:$0xff]   ;;  %v326_v4 = vld [vmem:[%s489_s1 + $0x50] sm:$0xff]  }
   0x2   :  { %v323_v1 = vld [vmem:[%s489_s1] sm:$0xff]   ;;  %297 = vmatprep.subr.bf16.mxu0 %v322_v0  ;;  %v325_v3 = vld [vmem:[%s489_s1 + $0x8] sm:$0xff]   ;;  %v327_v5 = vld [vmem:[%s489_s1 + $0x10] sm:$0xff]  }
   0x3   :  { %298 = vmatpush3.bf16.msra.mxu0 %v323_v1  ;;  %v328_v6 = vld [vmem:[%s489_s1 + $0x58] sm:$0xff]   ;;  %v330_v8 = vld [vmem:[%s489_s1 + $0x60] sm:$0xff]   ;;  %v332_v10 = vld [vmem:[%s489_s1 + $0x68] sm:$0xff]  }
   0x4   :  { %299 = vmatprep.subr.bf16.mxu0 %v324_v2  ;;  %v329_v7 = vld [vmem:[%s489_s1 + $0x18] sm:$0xff]   ;;  %v331_v9 = vld [vmem:[%s489_s1 + $0x20] sm:$0xff]  }
   0x5   :  { %v340_v11 = vld [vmem:[%s488_s0 + $0x4] ss:$8 sps:$4 sm:$0xff]  }
   0x7   :  { %300 = vmatpush3.bf16.msra.mxu0 %v325_v3 }
   0x8   :  { %301 = vmatprep.subr.bf16.mxu0 %v326_v4 }
   0xb   :  { %302 = vmatpush3.bf16.msra.mxu0 %v327_v5 }
   0xc   :  { %303 = vmatprep.subr.bf16.mxu0 %v328_v6 }
   0xf   :  { %304 = vmatpush3.bf16.msra.mxu0 %v329_v7 }
  0x10   :  { %305 = vmatprep.subr.bf16.mxu0 %v330_v8 }
  0x11   :  { %11 = vsyncpa [#allocation3], 0  ;;  %v333_v12 = vld [vmem:[%s489_s1 + $0x28] sm:$0xff]   ;;  %204 = vmatprep.mubr.bf16.mxu0 %v340_v11  ;;  %v334_v13 = vld [vmem:[%s489_s1 + $0x70] sm:$0xff]   ;;  %s369_s15 = smov [#allocation2]  }
  0x12   :  { %v335_v14 = vld [vmem:[%s489_s1 + $0x30] sm:$0xff]   ;;  %v336_v15 = vld [vmem:[%s489_s1 + $0x78] sm:$0xff]   ;;  %v338_v17 = vld [vmem:[%s488_s0] ss:$8 sps:$4 sm:$0xff]   ;;  %s265_s16 = sshll.u32 %s369_s15, 4  ;;  %s266_s16 = int_to_ptr.vmem [resolvable:$true] %s265_s16 }
  0x13   :  { %306 = vmatpush3.bf16.msra.mxu0 %v331_v9  ;;  %v337_v16 = vld [vmem:[%s489_s1 + $0x38] sm:$0xff]   ;;  %v276_v19 = vld [vmem:[%s490_s2] ss:$0 sm:$0xff]  ;;  %v214_v29 = vld [vmem:[%s491_s3 + $0x8] sm:$0xff]  ;;  %s345_s17 = scalar_lea.vmem %s266_s16, 256  ;;  %p350_p1 = scmp.lt.s32.totalorder %s266_s16, %s266_s16 }
  0x14   :  { %307 = vmatprep.subr.bf16.mxu0 %v332_v10  ;;  %v213_v24 = vld [vmem:[%s491_s3] sm:$0xff]  ;;  %p346_p0 = scmp.ne.s32.totalorder %s266_s16, %s345_s17  ;;  %p351_p2 = scmp.lt.s32.totalorder %s345_s17, %s345_s17 }
  0x15   :  { %v295_v46 = vld [vmem:[%s492_s4] ss:$0 sm:$0xff] }
  0x16   :  { %v296_v48 = vld [vmem:[%s493_s5] ss:$0 sm:$0xff]  ;;  %p352_p3 = por %p351_p2, %p350_p1 }
  0x17   :  { %308 = vmatpush3.bf16.msra.mxu0 %v333_v12 }
  0x18   :  { %309 = vmatprep.subr.bf16.mxu0 %v334_v13  ;;  %p353_p4 = pnand %p352_p3, %p346_p0 }
  0x1b   :  { %310 = vmatpush3.bf16.msra.mxu0 %v335_v14 }
  0x1c   :  { %311 = vmatprep.subr.bf16.mxu0 %v336_v15 }
  0x1f   :  { %312 = vmatpush3.bf16.msra.mxu0 %v337_v16 }
  0x22   :  { %205 = vmatmul.mubr.bf16.vlgmr.msra.gmra.mrb[0].mxu0 %v338_v17 }
  0xf5   :  { %v313_v18 = vpop.f32.mrb[0].mxu0 }
  0xf6   :  { %v314_v20 = vpop.f32.mrb[1].mxu0 }
  0xf7   :  { %v315_v21 = vadd.f32 %v314_v20, %v313_v18  ;;  %v316_v22 = vpop.f32.mrb[2].mxu0 }
  0xf8   :  { %v317_v23 = vpop.f32.mrb[3].mxu0 }
  0xf9   :  { %v207_v25 = vadd.f32 %v315_v21, %v276_v19  ;;  %v318_v26 = vadd.f32 %v317_v23, %v316_v22 }
  0xfb   :  { %v210_v27 = vadd.f32 %v318_v26, %v276_v19  ;;  %v215_v28 = vadd.f32 %v213_v24, %v207_v25 }
  0xfd   :  { %217 = vadd.xlane.f32.xlu0 %v215_v28  ;;  %v216_v30 = vadd.f32 %v214_v29, %v210_v27 }
 0x101   :  { %219 = vadd.xlane.f32.xlu0 %v216_v30 }
 0x18a   :  { %v218_v31 = vpop.xlane.xlu0 %217 }
 0x18b   :  { %v222_v32 = vmul.f32 0.0078125, %v218_v31 }
 0x18d   :  { %v224_v33 = vsub.f32 %v215_v28, %v222_v32 }
 0x18e   :  { %v220_v34 = vpop.xlane.xlu0 %219 }
 0x18f   :  { %v223_v35 = vmul.f32 0.0078125, %v220_v34  ;;  %v226_v36 = vmul.f32 %v224_v33, %v224_v33 }
 0x191   :  { %v225_v37 = vsub.f32 %v216_v30, %v223_v35  ;;  %228 = vadd.xlane.f32.xlu1 %v226_v36 }
 0x193   :  { %v227_v38 = vmul.f32 %v225_v37, %v225_v37 }
 0x195   :  { %230 = vadd.xlane.f32.xlu1 %v227_v38 }
 0x21e   :  { %v229_v39 = vpop.xlane.xlu1 %228 }
 0x21f   :  { %v232_v40 = vmul.f32 0.0078125, %v229_v39 }
 0x221   :  { %v234_v41 = vadd.f32 1e-12, %v232_v40 }
 0x222   :  { %v231_v42 = vpop.xlane.xlu1 %230 }
 0x223   :  { %341 = vrsqrt.f32 %v234_v41  ;;  %v233_v43 = vmul.f32 0.0078125, %v231_v42 }
 0x225   :  { %v235_v44 = vadd.f32 1e-12, %v233_v43 }
 0x227   :  { %343 = vrsqrt.f32 %v235_v44 }
 0x22d   :  { %v342_v45 = vpop.eup %341 }
 0x22e   :  { %v238_v47 = vmul.f32 %v342_v45, %v224_v33 }
 0x230   :  { %v247_v49 = vmul.f32 %v295_v46, %v238_v47 }
 0x231   :  { %v344_v50 = vpop.eup %343 }
 0x232   :  { %v239_v51 = vmul.f32 %v344_v50, %v225_v37  ;;  %v256_v52 = vadd.f32 %v296_v48, %v247_v49 }
 0x234   :  { %v248_v53 = vmul.f32 %v295_v46, %v239_v51  ;;  %258 = vst [vmem:[#allocation2] sm:$0xff] %v256_v52 }
 0x236   :  { %v257_v54 = vadd.f32 %v296_v48, %v248_v53 }
 0x238   :  { %259 = vst [vmem:[#allocation2 + $0x8] sm:$0xff] %v257_v54 }
 0x239   :  { %356 = shalt.err (!%p353_p4)
}
 0x23a   :  { %s357_s18 = scalar_lea.hbm %s494_s6, 256 }
 0x23b   :  { %p358_p5 = scmp.ne.s32.totalorder %s494_s6, %s357_s18  ;;  %p361_p6 = scmp.lt.u32.totalorder %s357_s18, %s494_s6 }
 0x23d   :  { %p363_p7 = pnand %p361_p6, %p358_p5 }
 0x23f   :  { %366 = shalt.err (!%p363_p7)
}
 0x240   :  { %s370_s23 = smov 128   ;;  %s371_s24 = smov 8  }
 0x241   :  { %271 = dma.vmem_to_hbm [thread:$0]  %s266_s16, 256, %s494_s6, [#allocation3], %s370_s23, %s370_s23, %s371_s24  }
 0x242   :  { %367 = dma.done.wait [#allocation3], 256  }
 0x243   :  { %368 = vsyncadd [#allocation3], 4294967040 }
 0x244   :  { %275 = vsyncpa [#allocation3], 1 }

</bundles_post_ra>
